<compile_context>
chip_gen: v7x
topology: tpu7x:2x2x1
jax: 0.10.0
libtpu: 0.0.40
codegen_flags: <defaults>
</compile_context>

<pallas_src>
import functools

import jax
import jax.numpy as jnp
from jax import lax
from jax.experimental import pallas as pl
from jax.experimental.pallas import tpu as pltpu

KEEP_PROB = 0.8                               # dropout p = 0.2
_KEEP_THRESH = int(KEEP_PROB * (1 << 32))     # uint32 keep threshold
_INV_KEEP = 1.0 / KEEP_PROB
_GOLDEN = 0x9E3779B1                          # per-tile seed stride

_IN, _H1, _H2, _OUT = 784, 256, 128, 10
_OUT_PAD = 128                                # lane-dense padded logits width
_NEG_BIG = -1.0e30                            # "minus inf" bias for padded lanes


def _round_up(n, m):
    return ((n + m - 1) // m) * m


def _uniform_bits(shape, seed_u32):
    """Counter-based hash PRNG -> uint32 bits. Pure jnp/lax ops only, so it
    lowers on Mosaic (TPU) and in interpret mode alike."""
    r = lax.broadcasted_iota(jnp.int32, shape, 0).astype(jnp.uint32)
    c = lax.broadcasted_iota(jnp.int32, shape, 1).astype(jnp.uint32)
    x = seed_u32 + r * jnp.uint32(2654435761) + c * jnp.uint32(40503)
    x = (x ^ (x >> 16)) * jnp.uint32(2246822519)
    x = (x ^ (x >> 13)) * jnp.uint32(3266489917)
    return x ^ (x >> 16)


def _dropout(h, seed_u32):
    bits = _uniform_bits(h.shape, seed_u32)
    keep = bits < jnp.uint32(_KEEP_THRESH)    # integer-threshold compare (VPU-cheap)
    return jnp.where(keep, h * _INV_KEEP, 0.0)


def _forward_math(x_bf16, w1, b1, w2, b2, w3, b3, base_seed_u32, recip):
    """Shared math for the kernel and the pure-JAX reference."""
    # fc1 + relu + dropout  (bf16 matmul, f32 accumulate & elementwise)
    h = jnp.dot(x_bf16, w1, preferred_element_type=jnp.float32) + b1
    h = jnp.maximum(h, 0.0)
    h = _dropout(h, base_seed_u32 ^ jnp.uint32(0x1111111))
    # fc2 + relu + dropout
    h = jnp.dot(h.astype(jnp.bfloat16), w2, preferred_element_type=jnp.float32) + b2
    h = jnp.maximum(h, 0.0)
    h = _dropout(h, base_seed_u32 ^ jnp.uint32(0x2222222))
    # fc3 (lane-padded; padded bias = -1e30 -> prob 0) + softmax over dim 1
    logits = jnp.dot(h.astype(jnp.bfloat16), w3,
                     preferred_element_type=jnp.float32) + b3
    m = jnp.max(logits, axis=1, keepdims=True)
    e = jnp.exp(logits - m)
    return e * recip(jnp.sum(e, axis=1, keepdims=True))


def mlp_kernel(seed_ref,                      # scalar-prefetch (SMEM)
               x_ref, w1_ref, b1_ref, w2_ref, b2_ref, w3_ref, b3_ref,
               o_ref):
    pid = pl.program_id(0)
    # distinct dropout stream per batch tile
    base = (seed_ref[0].astype(jnp.uint32)
            + pid.astype(jnp.uint32) * jnp.uint32(_GOLDEN))
    o_ref[...] = _forward_math(
        x_ref[...], w1_ref[...], b1_ref[...], w2_ref[...], b2_ref[...],
        w3_ref[...], b3_ref[...], base,
        lambda d: pl.reciprocal(d, approx=True))


@functools.partial(jax.jit, static_argnames=("tile_b",))
def _mlp_pallas(xpad, w1, b1, w2, b2, w3p, b3p, seed_arr, *, tile_b):
    bpad = xpad.shape[0]
    nb = bpad // tile_b
    grid_spec = pltpu.PrefetchScalarGridSpec(
        num_scalar_prefetch=1,
        grid=(nb,),
        in_specs=[
            pl.BlockSpec((tile_b, _IN), lambda i, seed: (i, 0)),     # x tile
            pl.BlockSpec((_IN, _H1), lambda i, seed: (0, 0)),        # resident weights
            pl.BlockSpec((1, _H1), lambda i, seed: (0, 0)),
            pl.BlockSpec((_H1, _H2), lambda i, seed: (0, 0)),
            pl.BlockSpec((1, _H2), lambda i, seed: (0, 0)),
            pl.BlockSpec((_H2, _OUT_PAD), lambda i, seed: (0, 0)),
            pl.BlockSpec((1, _OUT_PAD), lambda i, seed: (0, 0)),
        ],
        out_specs=pl.BlockSpec((tile_b, _OUT_PAD), lambda i, seed: (i, 0)),
    )
    return pl.pallas_call(
        mlp_kernel,
        out_shape=jax.ShapeDtypeStruct((bpad, _OUT_PAD), jnp.float32),
        grid_spec=grid_spec,
        compiler_params=pltpu.CompilerParams(
            dimension_semantics=("parallel",),        # shard batch across TCs (v7x)
            vmem_limit_bytes=32 * 1024 * 1024,        # safe on v5e/v6e/v7x
        ),
    )(seed_arr, xpad, w1, b1, w2, b2, w3p, b3p)


def my_model_forward(x, params, seed, *, tile_b=512):
    """x: any shape whose trailing dims flatten to 784 (e.g. (B, 1, 28, 28))."""
    b = x.shape[0]
    x2d = x.reshape((b, _IN)).astype(jnp.bfloat16)
    if b <= tile_b:
        tb = _round_up(b, 16)
        bpad = tb
    else:
        tb = tile_b
        bpad = _round_up(b, tb)
    if bpad != b:
        x2d = jnp.pad(x2d, ((0, bpad - b), (0, 0)))
    w1, b1, w2, b2, w3p, b3p = params
    seed_arr = jnp.asarray([seed], dtype=jnp.int32)
    out = _mlp_pallas(x2d, w1, b1, w2, b2, w3p, b3p, seed_arr, tile_b=tb)
    return out[:b, :_OUT]


def init_params(key):
    """Deterministic init mimicking PyTorch Linear default U(-1/sqrt(in), 1/sqrt(in));
    weights stored (in, out) in bf16, biases (1, out) in f32, fc3 lane-padded."""
    dims = [(_IN, _H1), (_H1, _H2), (_H2, _OUT)]
    raw = []
    for i, (fan_in, fan_out) in enumerate(dims):
        kw, kb = jax.random.split(jax.random.fold_in(key, i))
        bound = 1.0 / (fan_in ** 0.5)
        w = jax.random.uniform(kw, (fan_in, fan_out), jnp.float32, -bound, bound)
        b = jax.random.uniform(kb, (1, fan_out), jnp.float32, -bound, bound)
        raw += [w, b]
    w1, b1, w2, b2, w3, b3 = raw
    w3p = jnp.zeros((_H2, _OUT_PAD), jnp.float32).at[:, :_OUT].set(w3)
    b3p = jnp.full((1, _OUT_PAD), _NEG_BIG, jnp.float32).at[:, :_OUT].set(b3)
    return (w1.astype(jnp.bfloat16), b1,
            w2.astype(jnp.bfloat16), b2,
            w3p.astype(jnp.bfloat16), b3p)


def reference_forward(xpad_bf16, params, seed, tb):
    """Pure-JAX reference using identical math/masks (exact reciprocal)."""
    w1, b1, w2, b2, w3p, b3p = params
    nb = xpad_bf16.shape[0] // tb
    outs = []
    for i in range(nb):
        xt = xpad_bf16[i * tb:(i + 1) * tb]
        base = jnp.uint32(seed) + jnp.uint32(i) * jnp.uint32(_GOLDEN)
        outs.append(_forward_math(xt, w1, b1, w2, b2, w3p, b3p, base,
                                  lambda d: 1.0 / d))
    return jnp.concatenate(outs, axis=0)


if __name__ == "__main__":
    key = jax.random.PRNGKey(0)
    kx, kp = jax.random.split(key)

    B = 8
    x = jax.random.normal(kx, (B, 1, 28, 28), dtype=jnp.float32)
    params = init_params(kp)
    seed = 1234

    out = my_model_forward(x, params, seed)
    out = jax.block_until_ready(out)
    assert out.shape == (B, _OUT)

    # Cross-check against a pure-JAX reference with the same dropout masks.
    x2d = x.reshape((B, _IN)).astype(jnp.bfloat16)
    bpad = _round_up(B, 16)
    xpad = jnp.pad(x2d, ((0, bpad - B), (0, 0)))
    ref = reference_forward(xpad, params, seed, bpad)[:B, :_OUT]

    assert bool(jnp.all(jnp.isfinite(out)))
    assert jnp.allclose(jnp.sum(out, axis=1), 1.0, atol=2e-2)
    assert jnp.allclose(out, ref, atol=2e-2)
    print("KERNEL_OK")
</pallas_src>

<mosaic_0001>
module attributes {stable_mosaic.version = 11 : i64} {
  func.func @mlp_kernel(%arg0: i32, %arg1: memref<1xi32, #tpu.memory_space<smem>>, %arg2: memref<16x784xbf16, #tpu.memory_space<vmem>>, %arg3: memref<784x256xbf16, #tpu.memory_space<vmem>>, %arg4: memref<1x256xf32, #tpu.memory_space<vmem>>, %arg5: memref<256x128xbf16, #tpu.memory_space<vmem>>, %arg6: memref<1x128xf32, #tpu.memory_space<vmem>>, %arg7: memref<128x128xbf16, #tpu.memory_space<vmem>>, %arg8: memref<1x128xf32, #tpu.memory_space<vmem>>, %arg9: memref<16x128xf32, #tpu.memory_space<vmem>>) attributes {dimension_semantics = [#tpu.dimension_semantics<parallel>], iteration_bounds = array<i64: 1>, scalar_prefetch = 1 : i64, scratch_operands = 0 : i64, tpu.core_type = #tpu.core_type<tc>, window_params = [{transform_indices = @transform_0, window_bounds = array<i64: 16, 784>}, {pipeline_mode = #tpu.pipeline_mode<synchronous>, transform_indices = @transform_1, window_bounds = array<i64: 784, 256>}, {pipeline_mode = #tpu.pipeline_mode<synchronous>, transform_indices = @transform_2, window_bounds = array<i64: 1, 256>}, {pipeline_mode = #tpu.pipeline_mode<synchronous>, transform_indices = @transform_3, window_bounds = array<i64: 256, 128>}, {pipeline_mode = #tpu.pipeline_mode<synchronous>, transform_indices = @transform_4, window_bounds = array<i64: 1, 128>}, {pipeline_mode = #tpu.pipeline_mode<synchronous>, transform_indices = @transform_5, window_bounds = array<i64: 128, 128>}, {pipeline_mode = #tpu.pipeline_mode<synchronous>, transform_indices = @transform_6, window_bounds = array<i64: 1, 128>}, {transform_indices = @transform_7, window_bounds = array<i64: 16, 128>}]} {
    %c0 = arith.constant 0 : index
    %0 = memref.load %arg1[%c0] : memref<1xi32, #tpu.memory_space<smem>>
    %c-1640531535_i32 = arith.constant -1640531535 : i32
    %1 = arith.muli %arg0, %c-1640531535_i32 : i32
    %2 = arith.addi %0, %1 : i32
    %c0_0 = arith.constant 0 : index
    %c0_1 = arith.constant 0 : index
    %3 = vector.load %arg2[%c0_0, %c0_1] : memref<16x784xbf16, #tpu.memory_space<vmem>>, vector<16x784xbf16>
    %c0_2 = arith.constant 0 : index
    %c0_3 = arith.constant 0 : index
    %4 = vector.load %arg3[%c0_2, %c0_3] : memref<784x256xbf16, #tpu.memory_space<vmem>>, vector<784x256xbf16>
    %c0_4 = arith.constant 0 : index
    %c0_5 = arith.constant 0 : index
    %5 = vector.load %arg4[%c0_4, %c0_5] : memref<1x256xf32, #tpu.memory_space<vmem>>, vector<1x256xf32>
    %c0_6 = arith.constant 0 : index
    %c0_7 = arith.constant 0 : index
    %6 = vector.load %arg5[%c0_6, %c0_7] : memref<256x128xbf16, #tpu.memory_space<vmem>>, vector<256x128xbf16>
    %c0_8 = arith.constant 0 : index
    %c0_9 = arith.constant 0 : index
    %7 = vector.load %arg6[%c0_8, %c0_9] : memref<1x128xf32, #tpu.memory_space<vmem>>, vector<1x128xf32>
    %c0_10 = arith.constant 0 : index
    %c0_11 = arith.constant 0 : index
    %8 = vector.load %arg7[%c0_10, %c0_11] : memref<128x128xbf16, #tpu.memory_space<vmem>>, vector<128x128xbf16>
    %c0_12 = arith.constant 0 : index
    %c0_13 = arith.constant 0 : index
    %9 = vector.load %arg8[%c0_12, %c0_13] : memref<1x128xf32, #tpu.memory_space<vmem>>, vector<1x128xf32>
    %cst = arith.constant dense<0.000000e+00> : vector<16x256xf32>
    %10 = tpu.matmul %3, %4, %cst {dimension_numbers = #tpu.dot_dimension_numbers<[1], [0], [0], [1], [0, 0, 1, 1], [], []>} : vector<16x784xbf16>, vector<784x256xbf16>, vector<16x256xf32> -> vector<16x256xf32>
    %11 = vector.broadcast %5 : vector<1x256xf32> to vector<16x256xf32>
    %12 = arith.addf %10, %11 : vector<16x256xf32>
    %cst_14 = arith.constant 0.000000e+00 : f32
    %13 = vector.broadcast %cst_14 : f32 to vector<16x256xf32>
    %14 = arith.maximumf %12, %13 : vector<16x256xf32>
    %c17895697_i32 = arith.constant 17895697 : i32
    %15 = arith.xori %2, %c17895697_i32 : i32
    %16 = tpu.iota {dimensions = array<i32: 0>} : vector<16x256xi32>
    %17 = tpu.iota {dimensions = array<i32: 1>} : vector<16x256xi32>
    %c-1640531535_i32_15 = arith.constant -1640531535 : i32
    %18 = vector.broadcast %c-1640531535_i32_15 : i32 to vector<16x256xi32>
    %19 = arith.muli %16, %18 : vector<16x256xi32>
    %20 = vector.broadcast %15 : i32 to vector<16x256xi32>
    %21 = arith.addi %20, %19 : vector<16x256xi32>
    %c40503_i32 = arith.constant 40503 : i32
    %22 = vector.broadcast %c40503_i32 : i32 to vector<16x256xi32>
    %23 = arith.muli %17, %22 : vector<16x256xi32>
    %24 = arith.addi %21, %23 : vector<16x256xi32>
    %c16_i32 = arith.constant 16 : i32
    %25 = vector.broadcast %c16_i32 : i32 to vector<16x256xi32>
    %26 = arith.shrui %24, %25 : vector<16x256xi32>
    %27 = arith.xori %24, %26 : vector<16x256xi32>
    %c-2048144777_i32 = arith.constant -2048144777 : i32
    %28 = vector.broadcast %c-2048144777_i32 : i32 to vector<16x256xi32>
    %29 = arith.muli %27, %28 : vector<16x256xi32>
    %c13_i32 = arith.constant 13 : i32
    %30 = vector.broadcast %c13_i32 : i32 to vector<16x256xi32>
    %31 = arith.shrui %29, %30 : vector<16x256xi32>
    %32 = arith.xori %29, %31 : vector<16x256xi32>
    %c-1028477379_i32 = arith.constant -1028477379 : i32
    %33 = vector.broadcast %c-1028477379_i32 : i32 to vector<16x256xi32>
    %34 = arith.muli %32, %33 : vector<16x256xi32>
    %c16_i32_16 = arith.constant 16 : i32
    %35 = vector.broadcast %c16_i32_16 : i32 to vector<16x256xi32>
    %36 = arith.shrui %34, %35 : vector<16x256xi32>
    %37 = arith.xori %34, %36 : vector<16x256xi32>
    %c-858993460_i32 = arith.constant -858993460 : i32
    %38 = vector.broadcast %c-858993460_i32 : i32 to vector<16x256xi32>
    %39 = arith.cmpi ult, %37, %38 : vector<16x256xi32>
    %cst_17 = arith.constant 1.250000e+00 : f32
    %40 = vector.broadcast %cst_17 : f32 to vector<16x256xf32>
    %41 = arith.mulf %14, %40 : vector<16x256xf32>
    %cst_18 = arith.constant 0.000000e+00 : f32
    %42 = vector.broadcast %cst_18 : f32 to vector<16x256xf32>
    %43 = arith.select %39, %41, %42 : vector<16x256xi1>, vector<16x256xf32>
    %44 = arith.truncf %43 : vector<16x256xf32> to vector<16x256xbf16>
    %cst_19 = arith.constant dense<0.000000e+00> : vector<16x128xf32>
    %45 = tpu.matmul %44, %6, %cst_19 {dimension_numbers = #tpu.dot_dimension_numbers<[1], [0], [0], [1], [0, 0, 1, 1], [], []>} : vector<16x256xbf16>, vector<256x128xbf16>, vector<16x128xf32> -> vector<16x128xf32>
    %46 = vector.broadcast %7 : vector<1x128xf32> to vector<16x128xf32>
    %47 = arith.addf %45, %46 : vector<16x128xf32>
    %cst_20 = arith.constant 0.000000e+00 : f32
    %48 = vector.broadcast %cst_20 : f32 to vector<16x128xf32>
    %49 = arith.maximumf %47, %48 : vector<16x128xf32>
    %c35791394_i32 = arith.constant 35791394 : i32
    %50 = arith.xori %2, %c35791394_i32 : i32
    %51 = tpu.iota {dimensions = array<i32: 0>} : vector<16x128xi32>
    %52 = tpu.iota {dimensions = array<i32: 1>} : vector<16x128xi32>
    %c-1640531535_i32_21 = arith.constant -1640531535 : i32
    %53 = vector.broadcast %c-1640531535_i32_21 : i32 to vector<16x128xi32>
    %54 = arith.muli %51, %53 : vector<16x128xi32>
    %55 = vector.broadcast %50 : i32 to vector<16x128xi32>
    %56 = arith.addi %55, %54 : vector<16x128xi32>
    %c40503_i32_22 = arith.constant 40503 : i32
    %57 = vector.broadcast %c40503_i32_22 : i32 to vector<16x128xi32>
    %58 = arith.muli %52, %57 : vector<16x128xi32>
    %59 = arith.addi %56, %58 : vector<16x128xi32>
    %c16_i32_23 = arith.constant 16 : i32
    %60 = vector.broadcast %c16_i32_23 : i32 to vector<16x128xi32>
    %61 = arith.shrui %59, %60 : vector<16x128xi32>
    %62 = arith.xori %59, %61 : vector<16x128xi32>
    %c-2048144777_i32_24 = arith.constant -2048144777 : i32
    %63 = vector.broadcast %c-2048144777_i32_24 : i32 to vector<16x128xi32>
    %64 = arith.muli %62, %63 : vector<16x128xi32>
    %c13_i32_25 = arith.constant 13 : i32
    %65 = vector.broadcast %c13_i32_25 : i32 to vector<16x128xi32>
    %66 = arith.shrui %64, %65 : vector<16x128xi32>
    %67 = arith.xori %64, %66 : vector<16x128xi32>
    %c-1028477379_i32_26 = arith.constant -1028477379 : i32
    %68 = vector.broadcast %c-1028477379_i32_26 : i32 to vector<16x128xi32>
    %69 = arith.muli %67, %68 : vector<16x128xi32>
    %c16_i32_27 = arith.constant 16 : i32
    %70 = vector.broadcast %c16_i32_27 : i32 to vector<16x128xi32>
    %71 = arith.shrui %69, %70 : vector<16x128xi32>
    %72 = arith.xori %69, %71 : vector<16x128xi32>
    %c-858993460_i32_28 = arith.constant -858993460 : i32
    %73 = vector.broadcast %c-858993460_i32_28 : i32 to vector<16x128xi32>
    %74 = arith.cmpi ult, %72, %73 : vector<16x128xi32>
    %cst_29 = arith.constant 1.250000e+00 : f32
    %75 = vector.broadcast %cst_29 : f32 to vector<16x128xf32>
    %76 = arith.mulf %49, %75 : vector<16x128xf32>
    %cst_30 = arith.constant 0.000000e+00 : f32
    %77 = vector.broadcast %cst_30 : f32 to vector<16x128xf32>
    %78 = arith.select %74, %76, %77 : vector<16x128xi1>, vector<16x128xf32>
    %79 = arith.truncf %78 : vector<16x128xf32> to vector<16x128xbf16>
    %cst_31 = arith.constant dense<0.000000e+00> : vector<16x128xf32>
    %80 = tpu.matmul %79, %8, %cst_31 {dimension_numbers = #tpu.dot_dimension_numbers<[1], [0], [0], [1], [0, 0, 1, 1], [], []>} : vector<16x128xbf16>, vector<128x128xbf16>, vector<16x128xf32> -> vector<16x128xf32>
    %81 = vector.broadcast %9 : vector<1x128xf32> to vector<16x128xf32>
    %82 = arith.addf %80, %81 : vector<16x128xf32>
    %cst_32 = arith.constant dense<0xFF800000> : vector<16xf32>
    %83 = vector.multi_reduction <maximumf>, %82, %cst_32 [1] : vector<16x128xf32> to vector<16xf32>
    %84 = vector.shape_cast %83 : vector<16xf32> to vector<16x1xf32>
    %85 = vector.broadcast %84 : vector<16x1xf32> to vector<16x128xf32>
    %86 = arith.subf %82, %85 : vector<16x128xf32>
    %87 = math.exp %86 : vector<16x128xf32>
    %cst_33 = arith.constant dense<0.000000e+00> : vector<16xf32>
    %88 = vector.multi_reduction <add>, %87, %cst_33 [1] : vector<16x128xf32> to vector<16xf32>
    %89 = vector.shape_cast %88 : vector<16xf32> to vector<16x1xf32>
    %90 = tpu.reciprocal %89 {approx = true} : vector<16x1xf32> -> vector<16x1xf32>
    %91 = vector.broadcast %90 : vector<16x1xf32> to vector<16x128xf32>
    %92 = arith.mulf %87, %91 : vector<16x128xf32>
    %c0_34 = arith.constant 0 : index
    %c0_35 = arith.constant 0 : index
    %93 = vector.load %arg9[%c0_34, %c0_35] : memref<16x128xf32, #tpu.memory_space<vmem>>, vector<16x128xf32>
    tpu.vector_store %arg9[%c0_34, %c0_35], %92 {strides = array<i32>} : memref<16x128xf32, #tpu.memory_space<vmem>>, vector<16x128xf32>,
    return
  }
  func.func @transform_0(%arg0: i32, %arg1: memref<1xi32, #tpu.memory_space<smem>>) -> (i32, i32) {
    %c0_i32 = arith.constant 0 : i32
    %c0_i32_0 = arith.constant 0 : i32
    return %arg0, %c0_i32 : i32, i32
  }
  func.func @transform_1(%arg0: i32, %arg1: memref<1xi32, #tpu.memory_space<smem>>) -> (i32, i32) {
    %c0_i32 = arith.constant 0 : i32
    %c0_i32_0 = arith.constant 0 : i32
    %c0_i32_1 = arith.constant 0 : i32
    return %c0_i32, %c0_i32_0 : i32, i32
  }
  func.func @transform_2(%arg0: i32, %arg1: memref<1xi32, #tpu.memory_space<smem>>) -> (i32, i32) {
    %c0_i32 = arith.constant 0 : i32
    %c0_i32_0 = arith.constant 0 : i32
    %c0_i32_1 = arith.constant 0 : i32
    return %c0_i32, %c0_i32_0 : i32, i32
  }
  func.func @transform_3(%arg0: i32, %arg1: memref<1xi32, #tpu.memory_space<smem>>) -> (i32, i32) {
    %c0_i32 = arith.constant 0 : i32
    %c0_i32_0 = arith.constant 0 : i32
    %c0_i32_1 = arith.constant 0 : i32
    return %c0_i32, %c0_i32_0 : i32, i32
  }
  func.func @transform_4(%arg0: i32, %arg1: memref<1xi32, #tpu.memory_space<smem>>) -> (i32, i32) {
    %c0_i32 = arith.constant 0 : i32
    %c0_i32_0 = arith.constant 0 : i32
    %c0_i32_1 = arith.constant 0 : i32
    return %c0_i32, %c0_i32_0 : i32, i32
  }
  func.func @transform_5(%arg0: i32, %arg1: memref<1xi32, #tpu.memory_space<smem>>) -> (i32, i32) {
    %c0_i32 = arith.constant 0 : i32
    %c0_i32_0 = arith.constant 0 : i32
    %c0_i32_1 = arith.constant 0 : i32
    return %c0_i32, %c0_i32_0 : i32, i32
  }
  func.func @transform_6(%arg0: i32, %arg1: memref<1xi32, #tpu.memory_space<smem>>) -> (i32, i32) {
    %c0_i32 = arith.constant 0 : i32
    %c0_i32_0 = arith.constant 0 : i32
    %c0_i32_1 = arith.constant 0 : i32
    return %c0_i32, %c0_i32_0 : i32, i32
  }
  func.func @transform_7(%arg0: i32, %arg1: memref<1xi32, #tpu.memory_space<smem>>) -> (i32, i32) {
    %c0_i32 = arith.constant 0 : i32
    %c0_i32_0 = arith.constant 0 : i32
    return %arg0, %c0_i32 : i32, i32
  }
}

</mosaic_0001>

<bundles_post_ra>
// kernel: _mlp_pallas.1
= control target key start
LH: loop header
LB: loop body
LE: loop exit
PB: predicated region body
PF: predicated region fallthrough
CT: control target
= control target key end

     0   :  { %14 = vsyncpa [#allocation5], 0  ;;  %s2034_s0 = inlined_call_operand.<no memory space> [shape: s32[1], index: 0, kind: input, shape index: {}]   ;;  %s2035_s1 = inlined_call_operand.hbm [shape: bf16[16,784], index: 1, kind: input, shape index: {}]   ;;  %s2036_s2 = inlined_call_operand.hbm [shape: bf16[784,256], index: 2, kind: input, shape index: {}]   ;;  %s2037_s3 = inlined_call_operand.vmem [shape: f32[1,256], index: 3, kind: input, shape index: {}]   ;;  %s2038_s4 = inlined_call_operand.hbm [shape: bf16[256,128], index: 4, kind: input, shape index: {}]   ;;  %s2039_s5 = inlined_call_operand.vmem [shape: f32[1,128], index: 5, kind: input, shape index: {}]   ;;  %s2040_s6 = inlined_call_operand.hbm [shape: bf16[128,128], index: 6, kind: input, shape index: {}]   ;;  %s2041_s7 = inlined_call_operand.vmem [shape: f32[1,128], index: 7, kind: input, shape index: {}]   ;;  %s2042_s8 = inlined_call_operand.hbm [shape: f32[16,128], index: 8, kind: output, shape index: {}]  }
   0x1   :  { %15 = vsyncpa [#allocation8], 0 }
   0x2   :  { %16 = vsyncpa [#allocation11], 0 }
   0x3   :  { %17 = vsyncpa [#allocation6], 0  ;;  %s1862_s27 = smov [#allocation7]   ;;  %s1744_s9 = scalar_lea.hbm %s2036_s2, 12544 }
   0x4   :  { %s35_s28 = sshll.u32 %s1862_s27, 4  ;;  %p1745_p0 = scmp.ne.s32.totalorder %s2036_s2, %s1744_s9  ;;  %s36_s28 = int_to_ptr.vmem [resolvable:$true] %s35_s28 }
   0x5   :  { %p1748_p1 = scmp.lt.u32.totalorder %s1744_s9, %s2036_s2 }
   0x7   :  { %p1750_p2 = pnand %p1748_p1, %p1745_p0 }
   0x9   :  { %1753 = shalt.err (!%p1750_p2)
}
   0xa   :  { %s1754_s14 = scalar_lea.vmem %s36_s28, 12544  ;;  %p1759_p4 = scmp.lt.s32.totalorder %s36_s28, %s36_s28 }
   0xb   :  { %p1755_p3 = scmp.ne.s32.totalorder %s36_s28, %s1754_s14  ;;  %p1760_p5 = scmp.lt.s32.totalorder %s1754_s14, %s1754_s14 }
   0xd   :  { %p1761_p6 = por %p1760_p5, %p1759_p4 }
   0xf   :  { %p1762_p7 = pnand %p1761_p6, %p1755_p3 }
  0x11   :  { %1765 = shalt.err (!%p1762_p7)
}
  0x12   :  { %s1863_s15 = smov 128   ;;  %s1864_s16 = smov 8  }
  0x13   :  { %41 = dma.hbm_to_vmem [thread:$0]  %s2036_s2, 12544, %s36_s28, [#allocation8], %s1863_s15, %s1863_s15, %s1864_s16  }
  0x14   :  { %s1865_s19 = smov [#allocation4]   ;;  %s1766_s23 = scalar_lea.hbm %s2035_s1, 896 }
  0x15   :  { %s23_s20 = sshll.u32 %s1865_s19, 4  ;;  %p1767_p8 = scmp.ne.s32.totalorder %s2035_s1, %s1766_s23  ;;  %s24_s20 = int_to_ptr.vmem [resolvable:$true] %s23_s20 }
  0x16   :  { %p1770_p9 = scmp.lt.u32.totalorder %s1766_s23, %s2035_s1 }
  0x18   :  { %p1772_p10 = pnand %p1770_p9, %p1767_p8 }
  0x1a   :  { %1775 = shalt.err (!%p1772_p10)
}
  0x1b   :  { %s1776_s29 = scalar_lea.vmem %s24_s20, 896  ;;  %p1781_p12 = scmp.lt.s32.totalorder %s24_s20, %s24_s20 }
  0x1c   :  { %p1777_p11 = scmp.ne.s32.totalorder %s24_s20, %s1776_s29  ;;  %p1782_p13 = scmp.lt.s32.totalorder %s1776_s29, %s1776_s29 }
  0x1e   :  { %p1783_p0 = por %p1782_p13, %p1781_p12 }
  0x20   :  { %p1784_p1 = pnand %p1783_p0, %p1777_p11 }
  0x22   :  { %1787 = shalt.err (!%p1784_p1)
}
  0x23   :  { %s1866_s2 = smov 448   ;;  %s1867_s28 = smov 28  }
  0x24   :  { %29 = dma.hbm_to_vmem [thread:$0]  %s2035_s1, 896, %s24_s20, [#allocation5], %s1866_s2, %s1866_s2, %s1867_s28  }
  0x25   :  { %s1868_s10 = smov [#allocation9]   ;;  %s1788_s14 = scalar_lea.hbm %s2038_s4, 2048 }
  0x26   :  { %s49_s11 = sshll.u32 %s1868_s10, 4  ;;  %p1789_p2 = scmp.ne.s32.totalorder %s2038_s4, %s1788_s14  ;;  %s50_s11 = int_to_ptr.vmem [resolvable:$true] %s49_s11 }
  0x27   :  { %p1792_p3 = scmp.lt.u32.totalorder %s1788_s14, %s2038_s4 }
  0x29   :  { %p1794_p4 = pnand %p1792_p3, %p1789_p2 }
  0x2b   :  { %1797 = shalt.err (!%p1794_p4)
}
  0x2c   :  { %s1798_s22 = scalar_lea.vmem %s50_s11, 2048  ;;  %p1803_p6 = scmp.lt.s32.totalorder %s50_s11, %s50_s11 }
  0x2d   :  { %p1799_p5 = scmp.ne.s32.totalorder %s50_s11, %s1798_s22  ;;  %p1804_p7 = scmp.lt.s32.totalorder %s1798_s22, %s1798_s22 }
  0x2f   :  { %p1805_p8 = por %p1804_p7, %p1803_p6 }
  0x31   :  { %p1806_p9 = pnand %p1805_p8, %p1799_p5 }
  0x33   :  { %1809 = shalt.err (!%p1806_p9)
}
  0x34   :  { %s1869_s1 = smov 64   ;;  %s1870_s20 = smov 4  }
  0x35   :  { %55 = dma.hbm_to_vmem [thread:$0]  %s2038_s4, 2048, %s50_s11, [#allocation8], %s1869_s1, %s1869_s1, %s1870_s20  }
  0x36   :  { %s1871_s25 = smov [#allocation10]   ;;  %s1810_s2 = scalar_lea.hbm %s2040_s6, 1024 }
  0x37   :  { %s63_s26 = sshll.u32 %s1871_s25, 4  ;;  %p1811_p10 = scmp.ne.s32.totalorder %s2040_s6, %s1810_s2  ;;  %s64_s26 = int_to_ptr.vmem [resolvable:$true] %s63_s26 }
  0x38   :  { %p1814_p11 = scmp.lt.u32.totalorder %s1810_s2, %s2040_s6 }
  0x3a   :  { %p1816_p12 = pnand %p1814_p11, %p1811_p10 }
  0x3c   :  { %1819 = shalt.err (!%p1816_p12)
}
  0x3d   :  { %s1820_s12 = scalar_lea.vmem %s64_s26, 1024  ;;  %p1825_p0 = scmp.lt.s32.totalorder %s64_s26, %s64_s26 }
  0x3e   :  { %p1821_p13 = scmp.ne.s32.totalorder %s64_s26, %s1820_s12  ;;  %p1826_p1 = scmp.lt.s32.totalorder %s1820_s12, %s1820_s12 }
  0x40   :  { %p1827_p2 = por %p1826_p1, %p1825_p0 }
  0x42   :  { %p1828_p3 = pnand %p1827_p2, %p1821_p13 }
  0x44   :  { %1831 = shalt.err (!%p1828_p3)
}
  0x45   :  { %69 = dma.hbm_to_vmem [thread:$0]  %s2040_s6, 1024, %s64_s26, [#allocation11], %s1869_s1, %s1869_s1, %s1870_s20  }
  0x46   :  { %1854 = dma.done.wait [#allocation5], 896  }
  0x47   :  { %1855 = vsyncadd [#allocation5], 4294966400 }
  0x48   :  { %1856 = dma.done.wait [#allocation8], 14592  }
  0x49   :  { %1857 = vsyncadd [#allocation8], 4294952704 }
  0x4a   :  { %1858 = dma.done.wait [#allocation11], 1024  }
  0x4b   :  { %1859 = vsyncadd [#allocation11], 4294966272  ;;  %v1555_v0 = vld [vmem:[#allocation7 + $0x104] ss:$8 sps:$4 sm:$0xff]   ;;  %v1557_v1 = vld [vmem:[#allocation7 + $0x100] ss:$8 sps:$4 sm:$0xff]  }
  0x4c   :  { %828 = vmatprep.subr.bf16.mxu0 %v1555_v0  ;;  %v1558_v2 = vld [vmem:[#allocation7 + $0x114] ss:$8 sps:$4 sm:$0xff]   ;;  %v1560_v3 = vld [vmem:[#allocation7 + $0x110] ss:$8 sps:$4 sm:$0xff]   ;;  %v1561_v4 = vld [vmem:[#allocation7 + $0x124] ss:$8 sps:$4 sm:$0xff]  }
  0x4d   :  { %829 = vmatpush1.bf16.msra.mxu0 %v1557_v1  ;;  %v1563_v5 = vld [vmem:[#allocation7 + $0x120] ss:$8 sps:$4 sm:$0xff]   ;;  %v1564_v6 = vld [vmem:[#allocation7 + $0x134] ss:$8 sps:$4 sm:$0xff]   ;;  %v1566_v7 = vld [vmem:[#allocation7 + $0x130] ss:$8 sps:$4 sm:$0xff]  }
  0x4e   :  { %830 = vmatprep.subr.bf16.mxu0 %v1558_v2  ;;  %v1567_v8 = vld [vmem:[#allocation7 + $0x144] ss:$8 sps:$4 sm:$0xff]   ;;  %v1569_v9 = vld [vmem:[#allocation7 + $0x140] ss:$8 sps:$4 sm:$0xff]   ;;  %v1570_v10 = vld [vmem:[#allocation7 + $0x154] ss:$8 sps:$4 sm:$0xff]  }
  0x4f   :  { %v1572_v11 = vld [vmem:[#allocation7 + $0x150] ss:$8 sps:$4 sm:$0xff]   ;;  %v1573_v12 = vld [vmem:[#allocation7 + $0x164] ss:$8 sps:$4 sm:$0xff]   ;;  %v1575_v14 = vld [vmem:[#allocation7 + $0x160] ss:$8 sps:$4 sm:$0xff]  }
  0x50   :  { %v1605_v13 = vld [vmem:[#allocation4 + $0xc] ss:$28 sps:$4 sm:$0xff]   ;;  %v1612_v16 = vld [vmem:[#allocation7 + $0x4] ss:$8 sps:$4 sm:$0xff]   ;;  %v1617_v19 = vld [vmem:[#allocation7] ss:$8 sps:$4 sm:$0xff]  }
  0x51   :  { %831 = vmatpush1.bf16.msra.mxu0 %v1560_v3  ;;  %v1576_v15 = vld [vmem:[#allocation7 + $0x174] ss:$8 sps:$4 sm:$0xff]   ;;  %860 = vmatprep.mubr.bf16.mxu0 %v1605_v13  ;;  %v1578_v17 = vld [vmem:[#allocation7 + $0x170] ss:$8 sps:$4 sm:$0xff]   ;;  %v1579_v18 = vld [vmem:[#allocation7 + $0x184] ss:$8 sps:$4 sm:$0xff]  }
  0x52   :  { %832 = vmatprep.subr.bf16.mxu0 %v1561_v4  ;;  %785 = vmatprep.subr.bf16.mxu1 %v1612_v16  ;;  %v1618_v20 = vld [vmem:[#allocation7 + $0x14] ss:$8 sps:$4 sm:$0xff]   ;;  %v1581_v21 = vld [vmem:[#allocation7 + $0x180] ss:$8 sps:$4 sm:$0xff]   ;;  %v1623_v22 = vld [vmem:[#allocation7 + $0x10] ss:$8 sps:$4 sm:$0xff]  }
  0x53   :  { %786 = vmatpush1.bf16.msra.mxu1 %v1617_v19  ;;  %v1624_v23 = vld [vmem:[#allocation7 + $0x24] ss:$8 sps:$4 sm:$0xff]   ;;  %v1582_v24 = vld [vmem:[#allocation7 + $0x194] ss:$8 sps:$4 sm:$0xff]   ;;  %v1629_v25 = vld [vmem:[#allocation7 + $0x20] ss:$8 sps:$4 sm:$0xff]  }
  0x54   :  { %787 = vmatprep.subr.bf16.mxu1 %v1618_v20  ;;  %v1630_v26 = vld [vmem:[#allocation7 + $0x34] ss:$8 sps:$4 sm:$0xff]   ;;  %v1584_v27 = vld [vmem:[#allocation7 + $0x190] ss:$8 sps:$4 sm:$0xff]   ;;  %v1585_v28 = vld [vmem:[#allocation7 + $0x1a4] ss:$8 sps:$4 sm:$0xff]  }
  0x55   :  { %833 = vmatpush1.bf16.msra.mxu0 %v1563_v5  ;;  %v1635_v29 = vld [vmem:[#allocation7 + $0x30] ss:$8 sps:$4 sm:$0xff]   ;;  %v1636_v30 = vld [vmem:[#allocation7 + $0x44] ss:$8 sps:$4 sm:$0xff]   ;;  %v1587_v31 = vld [vmem:[#allocation7 + $0x1a0] ss:$8 sps:$4 sm:$0xff]  }
  0x56   :  { %834 = vmatprep.subr.bf16.mxu0 %v1564_v6  ;;  %v1588_v32 = vld [vmem:[#allocation7 + $0x1b4] ss:$8 sps:$4 sm:$0xff]   ;;  %v1641_v33 = vld [vmem:[#allocation7 + $0x40] ss:$8 sps:$4 sm:$0xff]   ;;  %v1590_v35 = vld [vmem:[#allocation7 + $0x1b0] ss:$8 sps:$4 sm:$0xff]  }
  0x57   :  { %788 = vmatpush1.bf16.msra.mxu1 %v1623_v22  ;;  %v1642_v34 = vld [vmem:[#allocation7 + $0x54] ss:$8 sps:$4 sm:$0xff]   ;;  %v1591_v36 = vld [vmem:[#allocation7 + $0x1c4] ss:$8 sps:$4 sm:$0xff]   ;;  %v1647_v37 = vld [vmem:[#allocation7 + $0x50] ss:$8 sps:$4 sm:$0xff]  }
  0x58   :  { %789 = vmatprep.subr.bf16.mxu1 %v1624_v23  ;;  %v1648_v38 = vld [vmem:[#allocation7 + $0x64] ss:$8 sps:$4 sm:$0xff]   ;;  %v1593_v39 = vld [vmem:[#allocation7 + $0x1c0] ss:$8 sps:$4 sm:$0xff]   ;;  %v1594_v40 = vld [vmem:[#allocation7 + $0x1d4] ss:$8 sps:$4 sm:$0xff]  }
  0x59   :  { %835 = vmatpush1.bf16.msra.mxu0 %v1566_v7  ;;  %v1653_v41 = vld [vmem:[#allocation7 + $0x60] ss:$8 sps:$4 sm:$0xff]   ;;  %v1654_v42 = vld [vmem:[#allocation7 + $0x74] ss:$8 sps:$4 sm:$0xff]   ;;  %v1596_v43 = vld [vmem:[#allocation7 + $0x1d0] ss:$8 sps:$4 sm:$0xff]  }
  0x5a   :  { %836 = vmatprep.subr.bf16.mxu0 %v1567_v8  ;;  %v1597_v44 = vld [vmem:[#allocation7 + $0x1e4] ss:$8 sps:$4 sm:$0xff]   ;;  %v1659_v45 = vld [vmem:[#allocation7 + $0x70] ss:$8 sps:$4 sm:$0xff]   ;;  %v1599_v47 = vld [vmem:[#allocation7 + $0x1e0] ss:$8 sps:$4 sm:$0xff]  }
  0x5b   :  { %790 = vmatpush1.bf16.msra.mxu1 %v1629_v25  ;;  %v1660_v46 = vld [vmem:[#allocation7 + $0x84] ss:$8 sps:$4 sm:$0xff]   ;;  %v1600_v48 = vld [vmem:[#allocation7 + $0x1f4] ss:$8 sps:$4 sm:$0xff]   ;;  %v1665_v49 = vld [vmem:[#allocation7 + $0x80] ss:$8 sps:$4 sm:$0xff]  }
  0x5c   :  { %791 = vmatprep.subr.bf16.mxu1 %v1630_v26  ;;  %v1666_v50 = vld [vmem:[#allocation7 + $0x94] ss:$8 sps:$4 sm:$0xff]   ;;  %v1602_v51 = vld [vmem:[#allocation7 + $0x1f0] ss:$8 sps:$4 sm:$0xff]   ;;  %v1608_v52 = vld [vmem:[#allocation7 + $0x204] ss:$8 sps:$4 sm:$0xff]  }
  0x5d   :  { %837 = vmatpush1.bf16.msra.mxu0 %v1569_v9  ;;  %v1671_v53 = vld [vmem:[#allocation7 + $0x90] ss:$8 sps:$4 sm:$0xff]   ;;  %v1672_v55 = vld [vmem:[#allocation7 + $0xa4] ss:$8 sps:$4 sm:$0xff]   ;;  %v1606_v56 = vld [vmem:[#allocation7 + $0x200] ss:$8 sps:$4 sm:$0xff]  }
  0x5e   :  { %838 = vmatprep.subr.bf16.mxu0 %v1570_v10  ;;  %v1603_v54 = vld [vmem:[#allocation4 + $0x8] ss:$28 sps:$4 sm:$0xff]   ;;  %v1698_v57 = vld [vmem:[#allocation4 + $0x14] ss:$28 sps:$4 sm:$0xff]   ;;  %v1677_v59 = vld [vmem:[#allocation7 + $0xa0] ss:$8 sps:$4 sm:$0xff]  }
  0x5f   :  { %792 = vmatpush1.bf16.msra.mxu1 %v1635_v29  ;;  %v1611_v58 = vld [vmem:[#allocation7 + $0x214] ss:$8 sps:$4 sm:$0xff]   ;;  %v1609_v61 = vld [vmem:[#allocation7 + $0x210] ss:$8 sps:$4 sm:$0xff]   ;;  %v1616_v62 = vld [vmem:[#allocation7 + $0x224] ss:$8 sps:$4 sm:$0xff]  }
  0x60   :  { %793 = vmatprep.subr.bf16.mxu1 %v1636_v30  ;;  %v1678_v60 = vld [vmem:[#allocation7 + $0xb4] ss:$8 sps:$4 sm:$0xff]   ;;  %v1683_v63 = vld [vmem:[#allocation7 + $0xb0] ss:$8 sps:$4 sm:$0xff]   ;;  %v1710_v0 = vld [vmem:[#allocation4 + $0x4] ss:$28 sps:$4 sm:$0xff]  }
  0x61   :  { %839 = vmatpush1.bf16.msra.mxu0 %v1572_v11  ;;  %v1684_v1 = vld [vmem:[#allocation7 + $0xc4] ss:$8 sps:$4 sm:$0xff]   ;;  %v1614_v2 = vld [vmem:[#allocation7 + $0x220] ss:$8 sps:$4 sm:$0xff]   ;;  %817 = vmatprep.mubr.bf16.mxu1 %v1710_v0  ;;  %v1622_v3 = vld [vmem:[#allocation7 + $0x234] ss:$8 sps:$4 sm:$0xff]  }
  0x62   :  { %840 = vmatprep.subr.bf16.mxu0 %v1573_v12  ;;  %v1689_v4 = vld [vmem:[#allocation7 + $0xc0] ss:$8 sps:$4 sm:$0xff]   ;;  %v1690_v5 = vld [vmem:[#allocation7 + $0xd4] ss:$8 sps:$4 sm:$0xff]   ;;  %v1620_v6 = vld [vmem:[#allocation7 + $0x230] ss:$8 sps:$4 sm:$0xff]  }
  0x63   :  { %794 = vmatpush1.bf16.msra.mxu1 %v1641_v33  ;;  %v1628_v7 = vld [vmem:[#allocation7 + $0x244] ss:$8 sps:$4 sm:$0xff]   ;;  %v1626_v8 = vld [vmem:[#allocation7 + $0x240] ss:$8 sps:$4 sm:$0xff]   ;;  %v1695_v9 = vld [vmem:[#allocation7 + $0xd0] ss:$8 sps:$4 sm:$0xff]  }
  0x64   :  { %795 = vmatprep.subr.bf16.mxu1 %v1642_v34  ;;  %v1634_v10 = vld [vmem:[#allocation7 + $0x254] ss:$8 sps:$4 sm:$0xff]   ;;  %v1699_v11 = vld [vmem:[#allocation7 + $0xe4] ss:$8 sps:$4 sm:$0xff]   ;;  %v1704_v12 = vld [vmem:[#allocation7 + $0xe0] ss:$8 sps:$4 sm:$0xff]  }
  0x65   :  { %841 = vmatpush1.bf16.msra.mxu0 %v1575_v14  ;;  %v1705_v13 = vld [vmem:[#allocation7 + $0xf4] ss:$8 sps:$4 sm:$0xff]   ;;  %v1632_v14 = vld [vmem:[#allocation7 + $0x250] ss:$8 sps:$4 sm:$0xff]   ;;  %v1708_v20 = vld [vmem:[#allocation4] ss:$28 sps:$4 sm:$0xff]  }
  0x66   :  { %842 = vmatprep.subr.bf16.mxu0 %v1576_v15  ;;  %v1640_v15 = vld [vmem:[#allocation7 + $0x264] ss:$8 sps:$4 sm:$0xff]   ;;  %v1707_v16 = vld [vmem:[#allocation7 + $0xf0] ss:$8 sps:$4 sm:$0xff]   ;;  %v1646_v19 = vld [vmem:[#allocation7 + $0x274] ss:$8 sps:$4 sm:$0xff]  }
  0x67   :  { %796 = vmatpush1.bf16.msra.mxu1 %v1647_v37  ;;  %v1714_v22 = vld [vmem:[#allocation9 + $0x48] sm:$0xff]   ;;  %v1716_v26 = vld [vmem:[#allocation9 + $0x50] sm:$0xff]   ;;  %v1718_v30 = vld [vmem:[#allocation9 + $0x58] sm:$0xff]   ;;  %vm781_vm0 = vcmask 130048   ;;  %s961_s14 = sxor.u32 17895697, %s2034_s0 }
  0x68   :  { %797 = vmatprep.subr.bf16.mxu1 %v1648_v38  ;;  %v1644_v23 = vld [vmem:[#allocation7 + $0x270] ss:$8 sps:$4 sm:$0xff]   ;;  %v1717_v29 = vld [vmem:[#allocation9 + $0x10] sm:$0xff]   ;;  %v1719_v33 = vld [vmem:[#allocation9 + $0x18] sm:$0xff]   ;;  %vm1874_vm7 = vmmov 0  }
  0x69   :  { %843 = vmatpush1.bf16.msra.mxu0 %v1578_v17  ;;  %v1712_v17 = vld [vmem:[#allocation9 + $0x40] sm:$0xff]   ;;  %v1715_v25 = vld [vmem:[#allocation9 + $0x8] sm:$0xff]   ;;  %v1662_v34 = vld [vmem:[#allocation7 + $0x2a0] ss:$8 sps:$4 sm:$0xff]   ;;  %s1170_s21 = sxor.u32 35791394, %s2034_s0 }
  0x6a   :  { %844 = vmatprep.subr.bf16.mxu0 %v1579_v18  ;;  %v1638_v18 = vld [vmem:[#allocation7 + $0x260] ss:$8 sps:$4 sm:$0xff]   ;;  %v1676_v37 = vld [vmem:[#allocation7 + $0x2c4] ss:$8 sps:$4 sm:$0xff]  }
  0x6b   :  { %798 = vmatpush1.bf16.msra.mxu1 %v1653_v41  ;;  %v1674_v38 = vld [vmem:[#allocation7 + $0x2c0] ss:$8 sps:$4 sm:$0xff]   ;;  %v1688_v41 = vld [vmem:[#allocation7 + $0x2e4] ss:$8 sps:$4 sm:$0xff]  }
  0x6c   :  { %799 = vmatprep.subr.bf16.mxu1 %v1654_v42  ;;  %v1686_v42 = vld [vmem:[#allocation7 + $0x2e0] ss:$8 sps:$4 sm:$0xff]  }
  0x6d   :  { %845 = vmatpush1.bf16.msra.mxu0 %v1581_v21  ;;  %v1713_v21 = vld [vmem:[#allocation9] sm:$0xff]  }
  0x6e   :  { %846 = vmatprep.subr.bf16.mxu0 %v1582_v24  ;;  %v1652_v24 = vld [vmem:[#allocation7 + $0x284] ss:$8 sps:$4 sm:$0xff]  }
  0x6f   :  { %800 = vmatpush1.bf16.msra.mxu1 %v1659_v45  ;;  %v1703_v45 = vld [vmem:[#allocation7 + $0x304] ss:$8 sps:$4 sm:$0xff]  }
  0x70   :  { %801 = vmatprep.subr.bf16.mxu1 %v1660_v46  ;;  %v1696_v46 = vld [vmem:[#allocation4 + $0x10] ss:$28 sps:$4 sm:$0xff]  }
  0x71   :  { %847 = vmatpush1.bf16.msra.mxu0 %v1584_v27  ;;  %v1650_v27 = vld [vmem:[#allocation7 + $0x280] ss:$8 sps:$4 sm:$0xff]  }
  0x72   :  { %848 = vmatprep.subr.bf16.mxu0 %v1585_v28  ;;  %v1658_v28 = vld [vmem:[#allocation7 + $0x294] ss:$8 sps:$4 sm:$0xff]  }
  0x73   :  { %802 = vmatpush1.bf16.msra.mxu1 %v1665_v49  ;;  %v1711_v49 = vld [vmem:[#allocation4 + $0x18] ss:$28 sps:$4 sm:$0xff]  }
  0x74   :  { %803 = vmatprep.subr.bf16.mxu1 %v1666_v50  ;;  %v1720_v50 = vld [vmem:[#allocation9 + $0x60] sm:$0xff]  }
  0x75   :  { %849 = vmatpush1.bf16.msra.mxu0 %v1587_v31  ;;  %v1656_v31 = vld [vmem:[#allocation7 + $0x290] ss:$8 sps:$4 sm:$0xff]  }
  0x76   :  { %850 = vmatprep.subr.bf16.mxu0 %v1588_v32  ;;  %v1664_v32 = vld [vmem:[#allocation7 + $0x2a4] ss:$8 sps:$4 sm:$0xff]  }
  0x77   :  { %804 = vmatpush1.bf16.msra.mxu1 %v1671_v53  ;;  %v1723_v53 = vld [vmem:[#allocation9 + $0x28] sm:$0xff]  }
  0x78   :  { %805 = vmatprep.subr.bf16.mxu1 %v1672_v55  ;;  %v1725_v55 = vld [vmem:[#allocation9 + $0x30] sm:$0xff]  }
  0x79   :  { %851 = vmatpush1.bf16.msra.mxu0 %v1590_v35  ;;  %v1670_v35 = vld [vmem:[#allocation7 + $0x2b4] ss:$8 sps:$4 sm:$0xff]  }
  0x7a   :  { %852 = vmatprep.subr.bf16.mxu0 %v1591_v36  ;;  %v1668_v36 = vld [vmem:[#allocation7 + $0x2b0] ss:$8 sps:$4 sm:$0xff]  }
  0x7b   :  { %806 = vmatpush1.bf16.msra.mxu1 %v1677_v59  ;;  %v246_v59 = vlaneseq }
  0x7c   :  { %807 = vmatprep.subr.bf16.mxu1 %v1678_v60 }
  0x7d   :  { %853 = vmatpush1.bf16.msra.mxu0 %v1593_v39  ;;  %v1682_v39 = vld [vmem:[#allocation7 + $0x2d4] ss:$8 sps:$4 sm:$0xff]   ;;  %v1973_v0 = vshrl.u32 %v246_v59, 7 }
  0x7e   :  { %854 = vmatprep.subr.bf16.mxu0 %v1594_v40  ;;  %v1680_v40 = vld [vmem:[#allocation7 + $0x2d0] ss:$8 sps:$4 sm:$0xff]  }
  0x7f   :  { %808 = vmatpush1.bf16.msra.mxu1 %v1683_v63 }
  0x80   :  { %809 = vmatprep.subr.bf16.mxu1 %v1684_v1  ;;  %v1976_v1 = vadd.s32 8, %v1973_v0 }
  0x81   :  { %855 = vmatpush1.bf16.msra.mxu0 %v1596_v43  ;;  %v1694_v43 = vld [vmem:[#allocation7 + $0x2f4] ss:$8 sps:$4 sm:$0xff]  }
  0x82   :  { %856 = vmatprep.subr.bf16.mxu0 %v1597_v44  ;;  %v1692_v44 = vld [vmem:[#allocation7 + $0x2f0] ss:$8 sps:$4 sm:$0xff]  }
  0x83   :  { %810 = vmatpush1.bf16.msra.mxu1 %v1689_v4  ;;  %v968_v4 = vmul.u32 2654435761, %v1973_v0 }
  0x84   :  { %811 = vmatprep.subr.bf16.mxu1 %v1690_v5  ;;  %v969_v5 = vmul.u32 2654435761, %v1976_v1 }
  0x85   :  { %857 = vmatpush1.bf16.msra.mxu0 %v1599_v47  ;;  %v1701_v47 = vld [vmem:[#allocation7 + $0x300] ss:$8 sps:$4 sm:$0xff]  }
  0x86   :  { %858 = vmatprep.subr.bf16.mxu0 %v1600_v48  ;;  %v1872_v48 = vmov 0  }
  0x87   :  { %812 = vmatpush1.bf16.msra.mxu1 %v1695_v9 }
  0x88   :  { %813 = vmatprep.subr.bf16.mxu1 %v1699_v11 }
  0x89   :  { %859 = vmatpush1.bf16.msra.mxu0 %v1602_v51  ;;  %v1721_v51 = vld [vmem:[#allocation9 + $0x20] sm:$0xff]  }
  0x8a   :  { %871 = vmatprep.subr.bf16.mxu0 %v1608_v52  ;;  %v1722_v52 = vld [vmem:[#allocation9 + $0x68] sm:$0xff]  }
  0x8b   :  { %814 = vmatpush1.bf16.msra.mxu1 %v1704_v12 }
  0x8c   :  { %861 = vmatmul.mubr.bf16.vlgmr.msra.gmra.mrb[0].mxu0 %v1603_v54  ;;  %815 = vmatprep.subr.bf16.mxu1 %v1705_v13  ;;  %v1724_v54 = vld [vmem:[#allocation9 + $0x70] sm:$0xff]  }
  0x8d   :  { %872 = vmatpush1.bf16.msra.mxu0 %v1606_v56  ;;  %903 = vmatprep.mubr.bf16.mxu0 %v1698_v57  ;;  %v1726_v56 = vld [vmem:[#allocation9 + $0x78] sm:$0xff]  }
  0x8e   :  { %873 = vmatprep.subr.bf16.mxu0 %v1611_v58  ;;  %v1727_v57 = vld [vmem:[#allocation9 + $0x38] sm:$0xff]   ;;  %v1873_v58 = vmov 0.0  }
  0x8f   :  { %816 = vmatpush1.bf16.msra.mxu1 %v1707_v16 }
  0x90   :  { %1474 = vmatprep.subr.bf16.mxu1 %v1712_v17 }
  0x91   :  { %874 = vmatpush1.bf16.msra.mxu0 %v1609_v61 }
  0x92   :  { %875 = vmatprep.subr.bf16.mxu0 %v1616_v62  ;;  %818 = vmatmul.mubr.bf16.vlgmr.msra.gmra.mrb[0].mxu1 %v1708_v20 }
  0x93   :  { %1475 = vmatpush3.bf16.msra.mxu1 %v1713_v21 }
  0x94   :  { %1476 = vmatprep.subr.bf16.mxu1 %v1714_v22 }
  0x95   :  { %876 = vmatpush1.bf16.msra.mxu0 %v1614_v2  ;;  %v966_v2 = vand.u32 127, %v246_v59 }
  0x96   :  { %877 = vmatprep.subr.bf16.mxu0 %v1622_v3 }
  0x97   :  { %1477 = vmatpush3.bf16.msra.mxu1 %v1715_v25  ;;  %v967_v3 = vadd.s32 128, %v966_v2 }
  0x98   :  { %1478 = vmatprep.subr.bf16.mxu1 %v1716_v26 }
  0x99   :  { %878 = vmatpush1.bf16.msra.mxu0 %v1620_v6  ;;  %v970_v6 = vstv %s961_s14  ;;  %v974_v9 = vmul.u32 40503, %v967_v3 }
  0x9a   :  { %879 = vmatprep.subr.bf16.mxu0 %v1628_v7  ;;  %v971_v7 = vadd.s32 %v970_v6, %v968_v4 }
  0x9b   :  { %1479 = vmatpush3.bf16.msra.mxu1 %v1717_v29 }
  0x9c   :  { %1480 = vmatprep.subr.bf16.mxu1 %v1718_v30  ;;  %v976_v11 = vadd.s32 %v974_v9, %v971_v7 }
  0x9d   :  { %880 = vmatpush1.bf16.msra.mxu0 %v1626_v8  ;;  %v972_v8 = vadd.s32 %v970_v6, %v969_v5 }
  0x9e   :  { %881 = vmatprep.subr.bf16.mxu0 %v1634_v10  ;;  %v1987_v10 = vmul.u32 40503, %v966_v2 }
  0x9f   :  { %1481 = vmatpush3.bf16.msra.mxu1 %v1719_v33  ;;  %v978_v12 = vadd.s32 %v974_v9, %v972_v8  ;;  %v252_v33 = vsub.s32 1, %v1973_v0 }
  0xa0   :  { %1482 = vmatprep.subr.bf16.mxu1 %v1720_v50  ;;  %v975_v13 = vadd.s32 %v1987_v10, %v971_v7 }
  0xa1   :  { %882 = vmatpush1.bf16.msra.mxu0 %v1632_v14  ;;  %v977_v14 = vadd.s32 %v1987_v10, %v972_v8  ;;  %v982_v16 = vshrl.u32 %v978_v12, 16 }
  0xa2   :  { %883 = vmatprep.subr.bf16.mxu0 %v1640_v15  ;;  %v980_v15 = vshrl.u32 %v976_v11, 16  ;;  %v979_v17 = vshrl.u32 %v975_v13, 16 }
  0xa3   :  { %1483 = vmatpush3.bf16.msra.mxu1 %v1721_v51  ;;  %v986_v20 = vxor.u32 %v982_v16, %v978_v12  ;;  %v1728_v16 = vld [vmem:[#allocation10] sm:$0xff]  }
  0xa4   :  { %1484 = vmatprep.subr.bf16.mxu1 %v1722_v52  ;;  %v983_v21 = vxor.u32 %v979_v17, %v975_v13  ;;  %v1729_v17 = vld [vmem:[#allocation10 + $0x8] sm:$0xff]  }
  0xa5   :  { %884 = vmatpush1.bf16.msra.mxu0 %v1638_v18  ;;  %v981_v18 = vshrl.u32 %v977_v14, 16 }
  0xa6   :  { %885 = vmatprep.subr.bf16.mxu0 %v1646_v19  ;;  %v984_v19 = vxor.u32 %v980_v15, %v976_v11  ;;  %v987_v25 = vmul.u32 2246822519, %v983_v21  ;;  %v1733_v21 = vld [vmem:[#allocation10 + $0x28] sm:$0xff]  }
  0xa7   :  { %1485 = vmatpush3.bf16.msra.mxu1 %v1723_v53  ;;  %v985_v22 = vxor.u32 %v981_v18, %v977_v14  ;;  %v1730_v18 = vld [vmem:[#allocation10 + $0x10] sm:$0xff]  }
  0xa8   :  { %1486 = vmatprep.subr.bf16.mxu1 %v1724_v54  ;;  %v991_v29 = vshrl.u32 %v987_v25, 13 }
  0xa9   :  { %886 = vmatpush1.bf16.msra.mxu0 %v1644_v23  ;;  %v988_v23 = vmul.u32 2246822519, %v984_v19  ;;  %v989_v26 = vmul.u32 2246822519, %v985_v22  ;;  %v1731_v19 = vld [vmem:[#allocation10 + $0x18] sm:$0xff]   ;;  %v1734_v22 = vld [vmem:[#allocation10 + $0x30] sm:$0xff]  }
  0xaa   :  { %887 = vmatprep.subr.bf16.mxu0 %v1652_v24  ;;  %v990_v24 = vmul.u32 2246822519, %v986_v20  ;;  %v1732_v20 = vld [vmem:[#allocation10 + $0x20] sm:$0xff]  }
  0xab   :  { %1487 = vmatpush3.bf16.msra.mxu1 %v1725_v55  ;;  %v993_v30 = vshrl.u32 %v989_v26, 13 }
  0xac   :  { %1488 = vmatprep.subr.bf16.mxu1 %v1726_v56 }
  0xad   :  { %888 = vmatpush1.bf16.msra.mxu0 %v1650_v27  ;;  %v992_v27 = vshrl.u32 %v988_v23, 13 }
  0xae   :  { %889 = vmatprep.subr.bf16.mxu0 %v1658_v28  ;;  %v994_v28 = vshrl.u32 %v990_v24, 13 }
  0xaf   :  { %1489 = vmatpush3.bf16.msra.mxu1 %v1727_v57 }
  0xb0   :  { %1505 = vmatprep.subr.bf16.mxu1 %v1873_v58 }
  0xb1   :  { %890 = vmatpush1.bf16.msra.mxu0 %v1656_v31  ;;  %v248_v31 = vsub.s32 0, %v1973_v0 }
  0xb2   :  { %891 = vmatprep.subr.bf16.mxu0 %v1664_v32  ;;  %v194_v32 = vld [vmem:[%s2037_s3] sm:$0x3] }
  0xb5   :  { %892 = vmatpush1.bf16.msra.mxu0 %v1662_v34  ;;  %v996_v34 = vxor.u32 %v992_v27, %v988_v23  ;;  %v1735_v23 = vld [vmem:[#allocation10 + $0x38] sm:$0xff]  }
  0xb6   :  { %893 = vmatprep.subr.bf16.mxu0 %v1670_v35  ;;  %v998_v35 = vxor.u32 %v994_v28, %v990_v24  ;;  %v1171_v24 = vstv %s1170_s21 }
  0xb9   :  { %894 = vmatpush1.bf16.msra.mxu0 %v1668_v36  ;;  %v995_v36 = vxor.u32 %v991_v29, %v987_v25  ;;  %v1172_v25 = vadd.s32 %v1171_v24, %v968_v4 }
  0xba   :  { %895 = vmatprep.subr.bf16.mxu0 %v1676_v37  ;;  %v997_v37 = vxor.u32 %v993_v30, %v989_v26  ;;  %v1173_v26 = vadd.s32 %v1171_v24, %v969_v5  ;;  %v1439_v5 = vld [vmem:[%s2039_s5] ss:$0 sm:$0xff] }
  0xbb   :  { %v1174_v27 = vadd.s32 %v1172_v25, %v1987_v10 }
  0xbc   :  { %v1175_v28 = vadd.s32 %v1173_v26, %v1987_v10 }
  0xbd   :  { %896 = vmatpush1.bf16.msra.mxu0 %v1674_v38  ;;  %v249_v38 = vrot.slane %v194_v32, %v248_v31  ;;  %v1176_v29 = vshrl.u32 %v1174_v27, 16 }
  0xbe   :  { %897 = vmatprep.subr.bf16.mxu0 %v1682_v39  ;;  %v253_v39 = vrot.slane %v194_v32, %v252_v33  ;;  %v1177_v30 = vshrl.u32 %v1175_v28, 16 }
  0xbf   :  { %v1178_v31 = vxor.u32 %v1176_v29, %v1174_v27 }
  0xc0   :  { %v1179_v32 = vxor.u32 %v1177_v30, %v1175_v28 }
  0xc1   :  { %898 = vmatpush1.bf16.msra.mxu0 %v1680_v40  ;;  %v1000_v40 = vmul.u32 3266489917, %v996_v34 }
  0xc2   :  { %899 = vmatprep.subr.bf16.mxu0 %v1688_v41  ;;  %v1002_v41 = vmul.u32 3266489917, %v998_v35  ;;  %v1181_v33 = vmul.u32 2246822519, %v1179_v32 }
  0xc4   :  { %v1183_v35 = vshrl.u32 %v1181_v33, 13 }
  0xc5   :  { %900 = vmatpush1.bf16.msra.mxu0 %v1686_v42  ;;  %v999_v42 = vmul.u32 3266489917, %v995_v36 }
  0xc6   :  { %901 = vmatprep.subr.bf16.mxu0 %v1694_v43  ;;  %v1001_v43 = vmul.u32 3266489917, %v997_v37  ;;  %v1185_v37 = vxor.u32 %v1183_v35, %v1181_v33 }
  0xc8   :  { %v1187_v0 = vmul.u32 3266489917, %v1185_v37 }
  0xc9   :  { %902 = vmatpush1.bf16.msra.mxu0 %v1692_v44 }
  0xca   :  { %914 = vmatprep.subr.bf16.mxu0 %v1703_v45  ;;  %v1189_v1 = vshrl.u32 %v1187_v0, 16 }
  0xcc   :  { %904 = vmatmul.mubr.bf16.vlgmr.msra.gmra.mrb[0].mxu0 %v1696_v46  ;;  %v1004_v46 = vshrl.u32 %v1000_v40, 16 }
  0xcd   :  { %915 = vmatpush1.bf16.msra.mxu0 %v1701_v47  ;;  %946 = vmatprep.mubr.bf16.mxu0 %v1872_v48  ;;  %v1006_v47 = vshrl.u32 %v1002_v41, 16  ;;  %v1003_v48 = vshrl.u32 %v999_v42, 16 }
  0xce   :  { %v1008_v57 = vxor.u32 %v1004_v46, %v1000_v40  ;;  %v1191_v46 = vxor.u32 %v1189_v1, %v1187_v0 }
  0xcf   :  { %v1010_v59 = vxor.u32 %v1006_v47, %v1002_v41  ;;  %v1007_v7 = vxor.u32 %v1003_v48, %v999_v42 }
  0xd0   :  { %vm1012_vm1 = vcmp.lt.u32.totalorder %v1008_v57, 3435973836  ;;  %vm1193_vm9 = vcmp.lt.u32.totalorder %v1191_v46, 3435973836 }
  0xd1   :  { %vm1014_vm2 = vcmp.lt.u32.totalorder %v1010_v59, 3435973836  ;;  %vm1011_vm3 = vcmp.lt.u32.totalorder %v1007_v7, 3435973836 }
  0xd2   :  { %vm1456_vm5 = vmpackc.low %vm1014_vm2, %vm1012_vm1 }
  0xd8   :  { %1438 = vmatmul.mubr.msk.bf16.vlgmr.msra.gmra.mrb[0].mxu0 %vm781_vm0, %v1711_v49  ;;  %v1005_v49 = vshrl.u32 %v1001_v43, 16 }
  0xda   :  { %v1009_v8 = vxor.u32 %v1005_v49, %v1001_v43 }
  0xdc   :  { %vm1013_vm4 = vcmp.lt.u32.totalorder %v1009_v8, 3435973836 }
  0xdd   :  { %vm1459_vm6 = vmpackc.low %vm1013_vm4, %vm1011_vm3 }
 0x165   :  { %v819_v60 = vpop.f32.mrb[0].mxu1 }
 0x166   :  { %v821_v61 = vpop.f32.mrb[1].mxu1  ;;  %v820_v44 = vadd.f32 %v819_v60, %v249_v38 }
 0x167   :  { %v823_v62 = vpop.f32.mrb[2].mxu1  ;;  %v822_v45 = vadd.f32 %v821_v61, %v253_v39 }
 0x168   :  { %v825_v63 = vpop.f32.mrb[3].mxu1  ;;  %v824_v51 = vadd.f32 %v823_v62, %v249_v38 }
 0x169   :  { %v826_v54 = vadd.f32 %v825_v63, %v253_v39 }
 0x1ab   :  { %v948_v50 = vpop.f32.mrb[0].mxu0 }
 0x1ac   :  { %v1526_v52 = vadd.f32 %v948_v50, %v820_v44  ;;  %v950_v53 = vpop.f32.mrb[1].mxu0 }
 0x1ad   :  { %v1528_v55 = vadd.f32 %v950_v53, %v822_v45  ;;  %v952_v56 = vpop.f32.mrb[2].mxu0  ;;  %v1462_v53 = vld [vmem:[%s2041_s7] ss:$0 sm:$0xff]  ;;  %s1875_s7 = smov [#allocation12]  }
 0x1ae   :  { %v957_v2 = vmax.f32 %v1526_v52, 0.0  ;;  %v1530_v3 = vadd.f32 %v952_v56, %v824_v51  ;;  %v954_v6 = vpop.f32.mrb[3].mxu0  ;;  %s1319_s20 = sshll.u32 %s1875_s7, 4  ;;  %s1320_s20 = int_to_ptr.vmem [resolvable:$true] %s1319_s20 }
 0x1af   :  { %v958_v60 = vmax.f32 %v1528_v55, 0.0  ;;  %v1532_v61 = vadd.f32 %v954_v6, %v826_v54  ;;  %s1832_s23 = scalar_lea.vmem %s1320_s20, 256  ;;  %p1837_p5 = scmp.lt.s32.totalorder %s1320_s20, %s1320_s20 }
 0x1b0   :  { %v959_v9 = vmax.f32 %v1530_v3, 0.0  ;;  %v1015_v12 = vmul.f32 1.25, %v957_v2  ;;  %p1833_p4 = scmp.ne.s32.totalorder %s1320_s20, %s1832_s23  ;;  %p1838_p6 = scmp.lt.s32.totalorder %s1832_s23, %s1832_s23 }
 0x1b1   :  { %v960_v11 = vmax.f32 %v1532_v61, 0.0  ;;  %v1016_v63 = vmul.f32 1.25, %v958_v60 }
 0x1b2   :  { %v1017_v62 = vmul.f32 1.25, %v959_v9  ;;  %p1839_p7 = por %p1838_p6, %p1837_p5 }
 0x1b3   :  { %v1018_v13 = vmul.f32 1.25, %v960_v11 }
 0x1b4   :  { %v1460_v14 = vpack.c.bf16 %v1017_v62, %v1015_v12  ;;  %p1840_p8 = pnand %p1839_p7, %p1833_p4 }
 0x1b5   :  { %v1457_v15 = vpack.c.bf16 %v1018_v13, %v1016_v63 }
 0x1b7   :  { %1458 = vmatprep.mubr.msk.bf16.mxu1 %vm1456_vm5, %v1457_v15 }
 0x1b8   :  { %1461 = vmatmul.mubr.msk.bf16.vlgmr.msra.gmra.mrb[4].mxu1 %vm1459_vm6, %v1460_v14 }
 0x1b9   :  { %1506 = vmatpush3.bf16.msra.mxu1 %v1728_v16  ;;  %1521 = vmatprep.mubr.msk.bf16.mxu1 %vm1874_vm7, %v1873_v58 }
 0x1ba   :  { %1507 = vmatprep.subr.bf16.mxu1 %v1873_v58 }
 0x1bd   :  { %1508 = vmatpush3.bf16.msra.mxu1 %v1729_v17 }
 0x1be   :  { %1509 = vmatprep.subr.bf16.mxu1 %v1873_v58 }
 0x1c1   :  { %1510 = vmatpush3.bf16.msra.mxu1 %v1730_v18 }
 0x1c2   :  { %1511 = vmatprep.subr.bf16.mxu1 %v1873_v58 }
 0x1c5   :  { %1512 = vmatpush3.bf16.msra.mxu1 %v1731_v19 }
 0x1c6   :  { %1513 = vmatprep.subr.bf16.mxu1 %v1873_v58 }
 0x1c9   :  { %1514 = vmatpush3.bf16.msra.mxu1 %v1732_v20 }
 0x1ca   :  { %1515 = vmatprep.subr.bf16.mxu1 %v1873_v58 }
 0x1cd   :  { %1516 = vmatpush3.bf16.msra.mxu1 %v1733_v21 }
 0x1ce   :  { %1517 = vmatprep.subr.bf16.mxu1 %v1873_v58 }
 0x1d1   :  { %1518 = vmatpush3.bf16.msra.mxu1 %v1734_v22 }
 0x1d2   :  { %1519 = vmatprep.subr.bf16.mxu1 %v1873_v58  ;;  %v1180_v58 = vmul.u32 2246822519, %v1178_v31 }
 0x1d4   :  { %v1182_v34 = vshrl.u32 %v1180_v58, 13 }
 0x1d5   :  { %1520 = vmatpush3.bf16.msra.mxu1 %v1735_v23 }
 0x1d6   :  { %v1184_v36 = vxor.u32 %v1182_v34, %v1180_v58 }
 0x1d8   :  { %v1186_v38 = vmul.u32 3266489917, %v1184_v36 }
 0x1da   :  { %v1188_v39 = vshrl.u32 %v1186_v38, 16 }
 0x1dc   :  { %v1190_v45 = vxor.u32 %v1188_v39, %v1186_v38 }
 0x1de   :  { %vm1192_vm8 = vcmp.lt.u32.totalorder %v1190_v45, 3435973836 }
 0x1df   :  { %vm1471_vm10 = vmpackc.low %vm1193_vm9, %vm1192_vm8 }
 0x28b   :  { %v1490_v4 = vpop.f32.mrb[4].mxu1 }
 0x28c   :  { %v1491_v10 = vpop.f32.mrb[5].mxu1 }
 0x28d   :  { %v1492_v40 = vadd.f32 %v1491_v10, %v1490_v4  ;;  %v1493_v41 = vpop.f32.mrb[6].mxu1 }
 0x28e   :  { %v1494_v42 = vpop.f32.mrb[7].mxu1 }
 0x28f   :  { %v1162_v43 = vadd.f32 %v1492_v40, %v1439_v5  ;;  %v1495_v44 = vadd.f32 %v1494_v42, %v1493_v41 }
 0x291   :  { %v1168_v47 = vmax.f32 %v1162_v43, 0.0  ;;  %v1165_v48 = vadd.f32 %v1495_v44, %v1439_v5 }
 0x293   :  { %v1169_v49 = vmax.f32 %v1165_v48, 0.0  ;;  %v1194_v50 = vmul.f32 1.25, %v1168_v47 }
 0x295   :  { %v1195_v51 = vmul.f32 1.25, %v1169_v49 }
 0x297   :  { %v1472_v52 = vpack.c.bf16 %v1195_v51, %v1194_v50 }
 0x299   :  { %1522 = vmatmul.mubr.msk.bf16.vlgmr.msra.gmra.mrb[8].mxu1 %vm1471_vm10, %v1472_v52 }
 0x36c   :  { %v1287_v54 = vpop.f32.mrb[8].mxu1 }
 0x36d   :  { %v1288_v55 = vadd.f32 %v1462_v53, %v1287_v54  ;;  %v1523_v56 = vpop.f32.mrb[9].mxu1 }
 0x36e   :  { %v1290_v57 = vpop.f32.mrb[10].mxu1 }
 0x36f   :  { %1294 = vmax.xlane.f32.xlu0 %v1288_v55  ;;  %v1524_v59 = vpop.f32.mrb[11].mxu1  ;;  %v1291_v2 = vadd.f32 %v1462_v53, %v1290_v57 }
 0x373   :  { %1296 = vmax.xlane.f32.xlu0 %v1291_v2 }
 0x3fc   :  { %v1295_v3 = vpop.xlane.xlu0 %1294 }
 0x3fd   :  { %v1298_v6 = vsub.f32 %v1288_v55, %v1295_v3 }
 0x3ff   :  { %v1300_v7 = vmul.f32 1.442695, %v1298_v6 }
 0x400   :  { %v1297_v8 = vpop.xlane.xlu0 %1296 }
 0x401   :  { %1736 = vpow2.f32 %v1300_v7  ;;  %v1299_v60 = vsub.f32 %v1291_v2, %v1297_v8 }
 0x403   :  { %v1302_v61 = vmul.f32 1.442695, %v1299_v60 }
 0x405   :  { %1738 = vpow2.f32 %v1302_v61 }
 0x40b   :  { %v1737_v9 = vpop.eup %1736 }
 0x40c   :  { %1304 = vadd.xlane.f32.xlu1 %v1737_v9 }
 0x40f   :  { %v1739_v11 = vpop.eup %1738 }
 0x410   :  { %1306 = vadd.xlane.f32.xlu1 %v1739_v11 }
 0x499   :  { %v1305_v12 = vpop.xlane.xlu1 %1304 }
 0x49a   :  { %1740 = vrcp.f32 %v1305_v12 }
 0x49d   :  { %v1307_v62 = vpop.xlane.xlu1 %1306 }
 0x49e   :  { %1742 = vrcp.f32 %v1307_v62 }
 0x4a4   :  { %v1741_v63 = vpop.eup %1740 }
 0x4a5   :  { %v1310_v13 = vmul.f32 %v1741_v63, %v1737_v9 }
 0x4a7   :  { %1312 = vst [vmem:[#allocation12] sm:$0xff] %v1310_v13 }
 0x4a8   :  { %v1743_v14 = vpop.eup %1742 }
 0x4a9   :  { %v1311_v15 = vmul.f32 %v1743_v14, %v1739_v11 }
 0x4ab   :  { %1313 = vst [vmem:[#allocation12 + $0x8] sm:$0xff] %v1311_v15 }
 0x4ac   :  { %1843 = shalt.err (!%p1840_p8)
}
 0x4ad   :  { %s1844_s26 = scalar_lea.hbm %s2042_s8, 256 }
 0x4ae   :  { %p1845_p9 = scmp.ne.s32.totalorder %s2042_s8, %s1844_s26  ;;  %p1848_p10 = scmp.lt.u32.totalorder %s1844_s26, %s2042_s8 }
 0x4b0   :  { %p1850_p11 = pnand %p1848_p10, %p1845_p9 }
 0x4b2   :  { %1853 = shalt.err (!%p1850_p11)
}
 0x4b3   :  { %1325 = dma.vmem_to_hbm [thread:$0]  %s1320_s20, 256, %s2042_s8, [#allocation6], %s1863_s15, %s1863_s15, %s1864_s16  }
 0x4b4   :  { %1860 = dma.done.wait [#allocation6], 256  }
 0x4b5   :  { %1861 = vsyncadd [#allocation6], 4294967040 }
 0x4b6   :  { %1329 = vsyncpa [#allocation5], 1 }
 0x4b7   :  { %1330 = vsyncpa [#allocation8], 1 }
 0x4b8   :  { %1331 = vsyncpa [#allocation11], 1 }
 0x4b9   :  { %1332 = vsyncpa [#allocation6], 1 }

</bundles_post_ra>
